<compile_context>
chip_gen: v7x
topology: tpu7x:2x2x1
jax: 0.10.0
libtpu: 0.0.40
codegen_flags: <defaults>
</compile_context>

<pallas_src>
import functools

import numpy as np
import jax
import jax.numpy as jnp
from jax import lax
from jax.experimental import pallas as pl
from jax.experimental.pallas import tpu as pltpu


# ---------------------------------------------------------------------------
# Camera math (parameter setup — plain numpy, mirrors kaolin helpers)
# ---------------------------------------------------------------------------
def perspectiveprojectionnp(fovy, ratio=1.0):
    tanfov = np.tan(fovy / 2.0)
    return np.asarray([1.0 / (ratio * tanfov), 1.0 / tanfov, -1.0],
                      dtype=np.float32).reshape(-1, 1)


def compute_camera_params(azimuth_deg, elevation_deg, distance):
    theta = np.deg2rad(azimuth_deg)
    phi = np.deg2rad(elevation_deg)
    cam_y = distance * np.sin(phi)
    temp = distance * np.cos(phi)
    cam_x = temp * np.cos(theta)
    cam_z = temp * np.sin(theta)
    cam_pos = np.array([cam_x, cam_y, cam_z], dtype=np.float64)
    axis_z = cam_pos.copy()
    axis_y = np.array([0.0, 1.0, 0.0])
    axis_x = np.cross(axis_y, axis_z)
    axis_y = np.cross(axis_z, axis_x)
    cam_mat = np.stack([axis_x, axis_y, axis_z])
    l2 = np.linalg.norm(cam_mat, axis=1, keepdims=True)
    l2[l2 == 0] = 1.0
    cam_mat = cam_mat / l2
    return cam_mat.astype(np.float32), cam_pos.astype(np.float32)


# ---------------------------------------------------------------------------
# Kernel 1: camera transform + perspective projection of vertices
# Camera params live in SMEM (scalar prefetch); scalar-from-SMEM * vector on VPU.
# ---------------------------------------------------------------------------
def _vertex_transform_kernel(cam_ref, pts_ref, camout_ref, xy_ref):
    b = pl.program_id(0)
    p = pts_ref[0]                                  # (3, P) object-space points
    dx = p[0:1, :] - cam_ref[b, 9]
    dy = p[1:2, :] - cam_ref[b, 10]
    dz = p[2:3, :] - cam_ref[b, 11]
    # rot @ (p - cam_pos): K=3 contraction, scalar * vector on the VPU (MXU-hostile)
    cx = cam_ref[b, 0] * dx + cam_ref[b, 1] * dy + cam_ref[b, 2] * dz
    cy = cam_ref[b, 3] * dx + cam_ref[b, 4] * dy + cam_ref[b, 5] * dz
    cz = cam_ref[b, 6] * dx + cam_ref[b, 7] * dy + cam_ref[b, 8] * dz
    camout_ref[0, 0:1, :] = cx                      # write rows directly (no concat)
    camout_ref[0, 1:2, :] = cy
    camout_ref[0, 2:3, :] = cz
    fx = cam_ref[b, 12]
    fy = cam_ref[b, 13]
    fz = cam_ref[b, 14]                             # = -1 for perspective projection
    zp = cz * fz
    # guard divide-by-~0 at the camera plane.
    # TODO(synk): proper near-plane clipping (reference renderer has none either).
    zp_safe = jnp.where(jnp.abs(zp) < 1e-10,
                        jnp.where(zp >= 0.0, 1e-10, -1e-10), zp)
    inv_z = 1.0 / zp_safe
    xy_ref[0, 0:1, :] = cx * fx * inv_z
    xy_ref[0, 1:2, :] = cy * fy * inv_z


def _vertex_transform(cam_tbl, pts_b3p):
    B, _, P = pts_b3p.shape
    gs = pltpu.PrefetchScalarGridSpec(
        num_scalar_prefetch=1,
        grid=(B,),
        in_specs=[pl.BlockSpec((1, 3, P), lambda b, cam: (b, 0, 0))],
        out_specs=(pl.BlockSpec((1, 3, P), lambda b, cam: (b, 0, 0)),
                   pl.BlockSpec((1, 2, P), lambda b, cam: (b, 0, 0))),
        scratch_shapes=[])
    return pl.pallas_call(
        _vertex_transform_kernel,
        grid_spec=gs,
        out_shape=(jax.ShapeDtypeStruct((B, 3, P), jnp.float32),
                   jax.ShapeDtypeStruct((B, 2, P), jnp.float32)),
        compiler_params=pltpu.CompilerParams(dimension_semantics=("parallel",)),
    )(cam_tbl, pts_b3p)


# ---------------------------------------------------------------------------
# Kernel 2: rasterizer (hard z-buffer + barycentric vertex-color interpolation)
#   * lane-dense flattened pixel layout: output (B, 4, Spad, 128)
#   * per-face attributes packed (B, 19, F) in SMEM (face axis last)
#   * per-tile face culling (bbox / backface / near-plane) via pl.when
# ---------------------------------------------------------------------------
def _raster_kernel(attrs_ref, im_ref, zbuf_ref, *, height, width):
    b = pl.program_id(0)
    t = pl.program_id(1)
    num_faces = attrs_ref.shape[2]
    ST, L = zbuf_ref.shape                      # (sublane tile, 128)
    pix_per_tile = ST * L

    # lane-dense flattened pixel coordinates for this tile
    sub_i = lax.broadcasted_iota(jnp.int32, (ST, L), 0)
    lane_i = lax.broadcasted_iota(jnp.int32, (ST, L), 1)
    pix_off = t * pix_per_tile
    pid = (pix_off + sub_i * L + lane_i).astype(jnp.float32)
    # row/col via float divide (+0.5 keeps floor exact away from integer boundaries)
    row_f = jnp.floor((pid + 0.5) * (1.0 / width))
    col_f = pid - row_f * width
    px = (2.0 * col_f + 1.0) * (1.0 / width) - 1.0     # pixel centers in NDC (x right)
    py = 1.0 - (2.0 * row_f + 1.0) * (1.0 / height)    # (y up)

    # conservative NDC y-range of the rows covered by this tile (for face culling)
    t_f = t.astype(jnp.float32)
    rows_per_tile = float(pix_per_tile) / float(width)
    row_start = t_f * rows_per_tile
    tile_ymax = 1.0 - 2.0 * (row_start - 1.0) / height
    tile_ymin = 1.0 - 2.0 * (row_start + rows_per_tile + 1.0) / height

    im_ref[...] = jnp.zeros_like(im_ref)
    zbuf_ref[...] = jnp.full((ST, L), -1e10, dtype=jnp.float32)

    def body(f, carry):
        x0 = attrs_ref[b, 0, f]; y0 = attrs_ref[b, 1, f]
        x1 = attrs_ref[b, 2, f]; y1 = attrs_ref[b, 3, f]
        x2 = attrs_ref[b, 4, f]; y2 = attrs_ref[b, 5, f]
        z0 = attrs_ref[b, 6, f]; z1 = attrs_ref[b, 7, f]; z2 = attrs_ref[b, 8, f]
        nz = attrs_ref[b, 18, f]

        # barycentric edge coefficients (scalar, hoisted before per-pixel work)
        e0y = y1 - y2; e0x = x2 - x1
        e1y = y2 - y0; e1x = x0 - x2
        denom = e0y * (x0 - x2) + e0x * (y0 - y2)
        valid = jnp.abs(denom) > 1e-10
        inv = 1.0 / jnp.where(valid, denom, 1.0)
        a0 = e0y * inv; b0 = e0x * inv
        a1 = e1y * inv; b1 = e1x * inv

        # per-tile culling: screen bbox overlap, backface (cam looks along -z so
        # front faces have unnormalized normal z > 0), degenerate, near-plane.
        ymin = jnp.minimum(jnp.minimum(y0, y1), y2)
        ymax = jnp.maximum(jnp.maximum(y0, y1), y2)
        xmin = jnp.minimum(jnp.minimum(x0, x1), x2)
        xmax = jnp.maximum(jnp.maximum(x0, x1), x2)
        overlap = ((ymin <= tile_ymax) & (ymax >= tile_ymin)
                   & (xmin <= 1.0) & (xmax >= -1.0))
        in_front = (z0 < -1e-8) & (z1 < -1e-8) & (z2 < -1e-8)
        do_face = valid & (nz > 0.0) & overlap & in_front

        @pl.when(do_face)
        def _():
            # signed-denominator barycentrics -> inside test is winding independent
            # TODO(synk): screen-space (non perspective-correct) interpolation,
            # matching the previous implementation / DIB-R linear rasterizer.
            dxp = px - x2
            dyp = py - y2
            w0 = a0 * dxp + b0 * dyp
            w1 = a1 * dxp + b1 * dyp
            w2 = 1.0 - w0 - w1
            inside = (w0 >= 0.0) & (w1 >= 0.0) & (w2 >= 0.0)
            z = w0 * z0 + w1 * z1 + w2 * z2       # closer == larger (less negative) z
            hit = inside & (z > zbuf_ref[...])
            zbuf_ref[...] = jnp.where(hit, z, zbuf_ref[...])
            for c in range(3):
                interp = (w0 * attrs_ref[b, 9 + c, f]
                          + w1 * attrs_ref[b, 12 + c, f]
                          + w2 * attrs_ref[b, 15 + c, f])
                im_ref[0, c] = jnp.where(hit, interp, im_ref[0, c])
            # hard coverage mask in channel 3 (also the silhouette output).
            # TODO(synk): DIB-R's CUDA rasterizer produces a *soft* silhouette
            # (exp(-d^2/sigma) aggregation over faces); hard coverage used here.
            im_ref[0, 3] = jnp.where(hit, 1.0, im_ref[0, 3])

        return carry

    lax.fori_loop(0, num_faces, body, 0, unroll=2)


def _rasterize(attrs, height, width):
    B = attrs.shape[0]
    HW = height * width
    S = pl.cdiv(HW, 128)                     # sublanes of flattened image
    MAX_ST = 256                             # ~32K pixels / tile keeps VMEM small (v7x safe)
    if S <= MAX_ST:
        ST = S
        Spad = S
    else:
        ST = MAX_ST
        Spad = ((S + MAX_ST - 1) // MAX_ST) * MAX_ST
    T = Spad // ST

    kernel = functools.partial(_raster_kernel, height=height, width=width)
    gs = pltpu.PrefetchScalarGridSpec(
        num_scalar_prefetch=1,
        grid=(B, T),
        in_specs=[],
        out_specs=pl.BlockSpec((1, 4, ST, 128), lambda b, t, attrs: (b, 0, t, 0)),
        scratch_shapes=[pltpu.VMEM((ST, 128), jnp.float32)])
    im = pl.pallas_call(
        kernel,
        grid_spec=gs,
        out_shape=jax.ShapeDtypeStruct((B, 4, Spad, 128), jnp.float32),
        compiler_params=pltpu.CompilerParams(
            dimension_semantics=("parallel", "parallel")),
    )(attrs)
    im = im.reshape(B, 4, Spad * 128)[:, :, :HW].reshape(B, 4, height, width)
    return im


# ---------------------------------------------------------------------------
# VertexColor renderer forward (kernels + gather glue)
# ---------------------------------------------------------------------------
def vc_render(vertices_bxpx3, faces_fx3, colors_bxpx3, camera_params, height, width):
    cam_rot, cam_pos, cam_proj = camera_params
    B = vertices_bxpx3.shape[0]

    pts_b3p = jnp.transpose(vertices_bxpx3, (0, 2, 1)).astype(jnp.float32)   # (B,3,P)

    # pack camera params into one SMEM scalar table: rot(9) | pos(3) | proj(3) | pad
    rot = jnp.asarray(cam_rot, jnp.float32).reshape(B, 9)
    pos = jnp.asarray(cam_pos, jnp.float32).reshape(B, 3)
    proj = jnp.broadcast_to(jnp.asarray(cam_proj, jnp.float32).reshape(1, 3), (B, 3))
    cam_tbl = jnp.concatenate([rot, pos, proj, jnp.zeros((B, 1), jnp.float32)], axis=1)

    cam_pts, xy = _vertex_transform(cam_tbl, pts_b3p)        # (B,3,P), (B,2,P)

    i0, i1, i2 = faces_fx3[:, 0], faces_fx3[:, 1], faces_fx3[:, 2]
    pf0 = jnp.take(cam_pts, i0, axis=2)                      # (B,3,F)
    pf1 = jnp.take(cam_pts, i1, axis=2)
    pf2 = jnp.take(cam_pts, i2, axis=2)

    # face normals: tiny elementwise math left to XLA (a separate pallas_call is
    # launch-overhead bound and forces an extra HBM round trip — perf feedback).
    v01 = pf1 - pf0
    v02 = pf2 - pf0
    normal = jnp.cross(v01, v02, axis=1)                     # (B,3,F)
    length = jnp.sqrt(jnp.sum(normal * normal, axis=1, keepdims=True))
    normal1 = normal / (length + 1e-15)

    # per-face packed attribute table, face axis LAST (SMEM-friendly layout):
    # rows 0..5: x0,y0,x1,y1,x2,y2 | 6..8: z0,z1,z2 | 9..17: rgb0,rgb1,rgb2 | 18: nz
    xyf0 = jnp.take(xy, i0, axis=2)                          # (B,2,F)
    xyf1 = jnp.take(xy, i1, axis=2)
    xyf2 = jnp.take(xy, i2, axis=2)
    zrow = jnp.stack([pf0[:, 2, :], pf1[:, 2, :], pf2[:, 2, :]], axis=1)   # (B,3,F)
    colors_b3p = jnp.transpose(colors_bxpx3, (0, 2, 1)).astype(jnp.float32)
    c0 = jnp.take(colors_b3p, i0, axis=2)                    # (B,3,F)
    c1 = jnp.take(colors_b3p, i1, axis=2)
    c2 = jnp.take(colors_b3p, i2, axis=2)
    nzrow = normal[:, 2:3, :]                                # (B,1,F)
    attrs = jnp.concatenate([xyf0, xyf1, xyf2, zrow, c0, c1, c2, nzrow],
                            axis=1).astype(jnp.float32)      # (B,19,F)

    im = _rasterize(attrs, height, width)                    # (B,4,H,W)

    imfeat = jnp.transpose(im, (0, 2, 3, 1))                 # (B,H,W,4)
    imrender = imfeat[..., :3]                               # rendered colors
    improb = imfeat[..., 3:4]                                # silhouette == coverage channel
    normal1_bxfx3 = jnp.transpose(normal1, (0, 2, 1))        # (B,F,3)
    return imrender, improb, normal1_bxfx3


# ---------------------------------------------------------------------------
# Renderer module (JAX re-implementation of the PyTorch wrapper)
# ---------------------------------------------------------------------------
class Renderer:
    def __init__(self, height, width, mode='VertexColor',
                 camera_center=None, camera_up=None, camera_fov_y=None):
        assert mode == 'VertexColor', 'only the VertexColor renderer is implemented'
        self.mode = mode
        self.height = height
        self.width = width
        yz_flip = np.eye(3, dtype=np.float32)
        yz_flip[1, 1], yz_flip[2, 2] = -1, -1
        self.yz_flip = jnp.asarray(yz_flip)   # parity with set_camera_parameters_from_RT_K
        if camera_center is None:
            self.camera_center = np.array([0, 0, 0], dtype=np.float32)
        if camera_up is None:
            self.camera_up = np.array([0, 1, 0], dtype=np.float32)
        if camera_fov_y is None:
            self.camera_fov_y = 49.13434207744484 * np.pi / 180.0
        self.camera_params = None

    def set_look_at_parameters(self, azimuth, elevation, distance):
        camera_projection_mtx = jnp.asarray(
            perspectiveprojectionnp(self.camera_fov_y, 1.0))
        mats, poss = [], []
        for a, e, d in zip(azimuth, elevation, distance):
            m, p = compute_camera_params(a, e, d)
            mats.append(m)
            poss.append(p)
        self.camera_params = [jnp.asarray(np.stack(mats)),
                              jnp.asarray(np.stack(poss)),
                              camera_projection_mtx]

    def set_camera_parameters(self, parameters):
        self.camera_params = parameters

    def __call__(self, points, colors):
        if self.camera_params is None:
            print('Camera parameters have not been set, default perspective parameters '
                  'of distance = 1, elevation = 30, azimuth = 0 are being used')
            self.set_look_at_parameters([0], [30], [1])
        assert self.camera_params[0].shape[0] == points[0].shape[0], \
            'Set camera parameters batch size must equal batch size of passed points'
        return vc_render(points[0], points[1], colors, self.camera_params,
                         self.height, self.width)


if __name__ == "__main__":
    key = jax.random.PRNGKey(0)
    B, H, W = 2, 16, 16

    # small cube mesh: 8 vertices, 12 triangles (CCW outward winding)
    cube = np.array([[-1, -1, -1], [1, -1, -1], [1, 1, -1], [-1, 1, -1],
                     [-1, -1, 1], [1, -1, 1], [1, 1, 1], [-1, 1, 1]],
                    dtype=np.float32) * 0.5
    faces_np = np.array([[4, 5, 6], [4, 6, 7], [1, 0, 3], [1, 3, 2],
                         [0, 4, 7], [0, 7, 3], [5, 1, 2], [5, 2, 6],
                         [3, 7, 6], [3, 6, 2], [0, 1, 5], [0, 5, 4]],
                        dtype=np.int32)
    P, F = cube.shape[0], faces_np.shape[0]

    k1, k2 = jax.random.split(key)
    vertices = jnp.asarray(cube)[None] + 0.05 * jax.random.normal(k1, (B, P, 3), jnp.float32)
    colors = jax.random.uniform(k2, (B, P, 3), jnp.float32)
    faces = jnp.asarray(faces_np)

    renderer = Renderer(H, W, mode='VertexColor')
    renderer.set_look_at_parameters([20.0, 65.0], [30.0, 45.0], [1.6, 1.8])

    imrender, improb, normal1 = renderer([vertices, faces], colors)
    jax.block_until_ready((imrender, improb, normal1))

    assert imrender.shape == (B, H, W, 3)
    assert improb.shape == (B, H, W, 1)
    assert normal1.shape == (B, F, 3)
    assert np.all(np.isfinite(np.asarray(imrender)))
    assert np.all(np.isfinite(np.asarray(improb)))
    assert np.all(np.isfinite(np.asarray(normal1)))
    print("KERNEL_OK")
</pallas_src>

<mosaic_0001>
module attributes {stable_mosaic.version = 11 : i64} {
  func.func @_vertex_transform_kernel(%arg0: i32, %arg1: memref<2x16xf32, #tpu.memory_space<smem>>, %arg2: memref<1x3x8xf32, #tpu.memory_space<vmem>>, %arg3: memref<1x3x8xf32, #tpu.memory_space<vmem>>, %arg4: memref<1x2x8xf32, #tpu.memory_space<vmem>>) attributes {dimension_semantics = [#tpu.dimension_semantics<parallel>], iteration_bounds = array<i64: 2>, scalar_prefetch = 1 : i64, scratch_operands = 0 : i64, tpu.core_type = #tpu.core_type<tc>, window_params = [{transform_indices = @transform_0, window_bounds = array<i64: 1, 3, 8>}, {transform_indices = @transform_1, window_bounds = array<i64: 1, 3, 8>}, {transform_indices = @transform_2, window_bounds = array<i64: 1, 2, 8>}]} {
    %c0 = arith.constant 0 : index
    %c0_0 = arith.constant 0 : index
    %c0_1 = arith.constant 0 : index
    %0 = vector.load %arg2[%c0, %c0_0, %c0_1] : memref<1x3x8xf32, #tpu.memory_space<vmem>>, vector<1x3x8xf32>
    %1 = vector.shape_cast %0 : vector<1x3x8xf32> to vector<3x8xf32>
    %2 = vector.extract_strided_slice %1 {offsets = [0, 0], sizes = [1, 8], strides = [1, 1]} : vector<3x8xf32> to vector<1x8xf32>
    %3 = arith.index_cast %arg0 : i32 to index
    %c9 = arith.constant 9 : index
    %4 = memref.load %arg1[%3, %c9] : memref<2x16xf32, #tpu.memory_space<smem>>
    %5 = vector.broadcast %4 : f32 to vector<1x8xf32>
    %6 = arith.subf %2, %5 : vector<1x8xf32>
    %7 = vector.extract_strided_slice %1 {offsets = [1, 0], sizes = [1, 8], strides = [1, 1]} : vector<3x8xf32> to vector<1x8xf32>
    %8 = arith.index_cast %arg0 : i32 to index
    %c10 = arith.constant 10 : index
    %9 = memref.load %arg1[%8, %c10] : memref<2x16xf32, #tpu.memory_space<smem>>
    %10 = vector.broadcast %9 : f32 to vector<1x8xf32>
    %11 = arith.subf %7, %10 : vector<1x8xf32>
    %12 = vector.extract_strided_slice %1 {offsets = [2, 0], sizes = [1, 8], strides = [1, 1]} : vector<3x8xf32> to vector<1x8xf32>
    %13 = arith.index_cast %arg0 : i32 to index
    %c11 = arith.constant 11 : index
    %14 = memref.load %arg1[%13, %c11] : memref<2x16xf32, #tpu.memory_space<smem>>
    %15 = vector.broadcast %14 : f32 to vector<1x8xf32>
    %16 = arith.subf %12, %15 : vector<1x8xf32>
    %17 = arith.index_cast %arg0 : i32 to index
    %c0_2 = arith.constant 0 : index
    %18 = memref.load %arg1[%17, %c0_2] : memref<2x16xf32, #tpu.memory_space<smem>>
    %19 = vector.broadcast %18 : f32 to vector<1x8xf32>
    %20 = arith.mulf %19, %6 : vector<1x8xf32>
    %21 = arith.index_cast %arg0 : i32 to index
    %c1 = arith.constant 1 : index
    %22 = memref.load %arg1[%21, %c1] : memref<2x16xf32, #tpu.memory_space<smem>>
    %23 = vector.broadcast %22 : f32 to vector<1x8xf32>
    %24 = arith.mulf %23, %11 : vector<1x8xf32>
    %25 = arith.addf %20, %24 : vector<1x8xf32>
    %26 = arith.index_cast %arg0 : i32 to index
    %c2 = arith.constant 2 : index
    %27 = memref.load %arg1[%26, %c2] : memref<2x16xf32, #tpu.memory_space<smem>>
    %28 = vector.broadcast %27 : f32 to vector<1x8xf32>
    %29 = arith.mulf %28, %16 : vector<1x8xf32>
    %30 = arith.addf %25, %29 : vector<1x8xf32>
    %31 = arith.index_cast %arg0 : i32 to index
    %c3 = arith.constant 3 : index
    %32 = memref.load %arg1[%31, %c3] : memref<2x16xf32, #tpu.memory_space<smem>>
    %33 = vector.broadcast %32 : f32 to vector<1x8xf32>
    %34 = arith.mulf %33, %6 : vector<1x8xf32>
    %35 = arith.index_cast %arg0 : i32 to index
    %c4 = arith.constant 4 : index
    %36 = memref.load %arg1[%35, %c4] : memref<2x16xf32, #tpu.memory_space<smem>>
    %37 = vector.broadcast %36 : f32 to vector<1x8xf32>
    %38 = arith.mulf %37, %11 : vector<1x8xf32>
    %39 = arith.addf %34, %38 : vector<1x8xf32>
    %40 = arith.index_cast %arg0 : i32 to index
    %c5 = arith.constant 5 : index
    %41 = memref.load %arg1[%40, %c5] : memref<2x16xf32, #tpu.memory_space<smem>>
    %42 = vector.broadcast %41 : f32 to vector<1x8xf32>
    %43 = arith.mulf %42, %16 : vector<1x8xf32>
    %44 = arith.addf %39, %43 : vector<1x8xf32>
    %45 = arith.index_cast %arg0 : i32 to index
    %c6 = arith.constant 6 : index
    %46 = memref.load %arg1[%45, %c6] : memref<2x16xf32, #tpu.memory_space<smem>>
    %47 = vector.broadcast %46 : f32 to vector<1x8xf32>
    %48 = arith.mulf %47, %6 : vector<1x8xf32>
    %49 = arith.index_cast %arg0 : i32 to index
    %c7 = arith.constant 7 : index
    %50 = memref.load %arg1[%49, %c7] : memref<2x16xf32, #tpu.memory_space<smem>>
    %51 = vector.broadcast %50 : f32 to vector<1x8xf32>
    %52 = arith.mulf %51, %11 : vector<1x8xf32>
    %53 = arith.addf %48, %52 : vector<1x8xf32>
    %54 = arith.index_cast %arg0 : i32 to index
    %c8 = arith.constant 8 : index
    %55 = memref.load %arg1[%54, %c8] : memref<2x16xf32, #tpu.memory_space<smem>>
    %56 = vector.broadcast %55 : f32 to vector<1x8xf32>
    %57 = arith.mulf %56, %16 : vector<1x8xf32>
    %58 = arith.addf %53, %57 : vector<1x8xf32>
    %c0_3 = arith.constant 0 : index
    %c0_4 = arith.constant 0 : index
    %c0_5 = arith.constant 0 : index
    %59 = vector.load %arg3[%c0_3, %c0_4, %c0_5] : memref<1x3x8xf32, #tpu.memory_space<vmem>>, vector<1x1x8xf32>
    %60 = vector.shape_cast %59 : vector<1x1x8xf32> to vector<1x8xf32>
    %61 = vector.shape_cast %30 : vector<1x8xf32> to vector<1x1x8xf32>
    tpu.vector_store %arg3[%c0_3, %c0_4, %c0_5], %61 {strides = array<i32>} : memref<1x3x8xf32, #tpu.memory_space<vmem>>, vector<1x1x8xf32>,
    %c0_6 = arith.constant 0 : index
    %c1_7 = arith.constant 1 : index
    %c0_8 = arith.constant 0 : index
    %62 = vector.load %arg3[%c0_6, %c1_7, %c0_8] : memref<1x3x8xf32, #tpu.memory_space<vmem>>, vector<1x1x8xf32>
    %63 = vector.shape_cast %62 : vector<1x1x8xf32> to vector<1x8xf32>
    %64 = vector.shape_cast %44 : vector<1x8xf32> to vector<1x1x8xf32>
    tpu.vector_store %arg3[%c0_6, %c1_7, %c0_8], %64 {strides = array<i32>} : memref<1x3x8xf32, #tpu.memory_space<vmem>>, vector<1x1x8xf32>,
    %c0_9 = arith.constant 0 : index
    %c2_10 = arith.constant 2 : index
    %c0_11 = arith.constant 0 : index
    %65 = vector.load %arg3[%c0_9, %c2_10, %c0_11] : memref<1x3x8xf32, #tpu.memory_space<vmem>>, vector<1x1x8xf32>
    %66 = vector.shape_cast %65 : vector<1x1x8xf32> to vector<1x8xf32>
    %67 = vector.shape_cast %58 : vector<1x8xf32> to vector<1x1x8xf32>
    tpu.vector_store %arg3[%c0_9, %c2_10, %c0_11], %67 {strides = array<i32>} : memref<1x3x8xf32, #tpu.memory_space<vmem>>, vector<1x1x8xf32>,
    %68 = arith.index_cast %arg0 : i32 to index
    %c12 = arith.constant 12 : index
    %69 = memref.load %arg1[%68, %c12] : memref<2x16xf32, #tpu.memory_space<smem>>
    %70 = arith.index_cast %arg0 : i32 to index
    %c13 = arith.constant 13 : index
    %71 = memref.load %arg1[%70, %c13] : memref<2x16xf32, #tpu.memory_space<smem>>
    %72 = arith.index_cast %arg0 : i32 to index
    %c14 = arith.constant 14 : index
    %73 = memref.load %arg1[%72, %c14] : memref<2x16xf32, #tpu.memory_space<smem>>
    %74 = vector.broadcast %73 : f32 to vector<1x8xf32>
    %75 = arith.mulf %58, %74 : vector<1x8xf32>
    %76 = math.absf %75 : vector<1x8xf32>
    %cst = arith.constant 1.000000e-10 : f32
    %77 = vector.broadcast %cst : f32 to vector<1x8xf32>
    %78 = arith.cmpf olt, %76, %77 : vector<1x8xf32>
    %cst_12 = arith.constant 0.000000e+00 : f32
    %79 = vector.broadcast %cst_12 : f32 to vector<1x8xf32>
    %80 = arith.cmpf oge, %75, %79 : vector<1x8xf32>
    %cst_13 = arith.constant 1.000000e-10 : f32
    %cst_14 = arith.constant -1.000000e-10 : f32
    %81 = vector.broadcast %cst_13 : f32 to vector<1x8xf32>
    %82 = vector.broadcast %cst_14 : f32 to vector<1x8xf32>
    %83 = arith.select %80, %81, %82 : vector<1x8xi1>, vector<1x8xf32>
    %84 = arith.select %78, %83, %75 : vector<1x8xi1>, vector<1x8xf32>
    %cst_15 = arith.constant 1.000000e+00 : f32
    %85 = vector.broadcast %cst_15 : f32 to vector<1x8xf32>
    %86 = arith.divf %85, %84 : vector<1x8xf32>
    %87 = vector.broadcast %69 : f32 to vector<1x8xf32>
    %88 = arith.mulf %30, %87 : vector<1x8xf32>
    %89 = arith.mulf %88, %86 : vector<1x8xf32>
    %c0_16 = arith.constant 0 : index
    %c0_17 = arith.constant 0 : index
    %c0_18 = arith.constant 0 : index
    %90 = vector.load %arg4[%c0_16, %c0_17, %c0_18] : memref<1x2x8xf32, #tpu.memory_space<vmem>>, vector<1x1x8xf32>
    %91 = vector.shape_cast %90 : vector<1x1x8xf32> to vector<1x8xf32>
    %92 = vector.shape_cast %89 : vector<1x8xf32> to vector<1x1x8xf32>
    tpu.vector_store %arg4[%c0_16, %c0_17, %c0_18], %92 {strides = array<i32>} : memref<1x2x8xf32, #tpu.memory_space<vmem>>, vector<1x1x8xf32>,
    %93 = vector.broadcast %71 : f32 to vector<1x8xf32>
    %94 = arith.mulf %44, %93 : vector<1x8xf32>
    %95 = arith.mulf %94, %86 : vector<1x8xf32>
    %c0_19 = arith.constant 0 : index
    %c1_20 = arith.constant 1 : index
    %c0_21 = arith.constant 0 : index
    %96 = vector.load %arg4[%c0_19, %c1_20, %c0_21] : memref<1x2x8xf32, #tpu.memory_space<vmem>>, vector<1x1x8xf32>
    %97 = vector.shape_cast %96 : vector<1x1x8xf32> to vector<1x8xf32>
    %98 = vector.shape_cast %95 : vector<1x8xf32> to vector<1x1x8xf32>
    tpu.vector_store %arg4[%c0_19, %c1_20, %c0_21], %98 {strides = array<i32>} : memref<1x2x8xf32, #tpu.memory_space<vmem>>, vector<1x1x8xf32>,
    return
  }
  func.func @transform_0(%arg0: i32, %arg1: memref<2x16xf32, #tpu.memory_space<smem>>) -> (i32, i32, i32) {
    %c0_i32 = arith.constant 0 : i32
    %c0_i32_0 = arith.constant 0 : i32
    %c0_i32_1 = arith.constant 0 : i32
    return %arg0, %c0_i32, %c0_i32_0 : i32, i32, i32
  }
  func.func @transform_1(%arg0: i32, %arg1: memref<2x16xf32, #tpu.memory_space<smem>>) -> (i32, i32, i32) {
    %c0_i32 = arith.constant 0 : i32
    %c0_i32_0 = arith.constant 0 : i32
    %c0_i32_1 = arith.constant 0 : i32
    return %arg0, %c0_i32, %c0_i32_0 : i32, i32, i32
  }
  func.func @transform_2(%arg0: i32, %arg1: memref<2x16xf32, #tpu.memory_space<smem>>) -> (i32, i32, i32) {
    %c0_i32 = arith.constant 0 : i32
    %c0_i32_0 = arith.constant 0 : i32
    %c0_i32_1 = arith.constant 0 : i32
    return %arg0, %c0_i32, %c0_i32_0 : i32, i32, i32
  }
}

</mosaic_0001>

<bundles_post_ra>
// kernel: tpu_custom_call.1
= control target key start
LH: loop header
LB: loop body
LE: loop exit
PB: predicated region body
PF: predicated region fallthrough
CT: control target
= control target key end

     0   :  { %s661_s0 = inlined_call_operand.vmem [shape: f32[2,16], index: 0, kind: input, shape index: {}]   ;;  %s662_s1 = inlined_call_operand.vmem [shape: f32[2,3,8], index: 1, kind: input, shape index: {}]   ;;  %s663_s2 = inlined_call_operand.vmem [shape: f32[2,3,8], index: 2, kind: output, shape index: {0}]   ;;  %s664_s3 = inlined_call_operand.hbm [shape: f32[2,2,8], index: 3, kind: output, shape index: {1}]  }
   0x1   :  { %s9_s14 = sshll.u32 %s661_s0, 4  ;;  %s10_s14 = int_to_ptr.vmem [resolvable:$true] %s9_s14 }
   0x2   :  { %s416_s15 = scalar_lea.vmem %s10_s14, 32  ;;  %p421_p1 = scmp.lt.s32.totalorder %s10_s14, %s10_s14 }
   0x3   :  { %p417_p0 = scmp.ne.s32.totalorder %s10_s14, %s416_s15  ;;  %p422_p2 = scmp.lt.s32.totalorder %s416_s15, %s416_s15 }
   0x5   :  { %p423_p3 = por %p422_p2, %p421_p1 }
   0x7   :  { %p424_p4 = pnand %p423_p3, %p417_p0 }
   0x9   :  { %427 = shalt.err (!%p424_p4)  }
   0xa   :  { %s494_s16 = smov [#allocation3]  }
   0xb   :  { %12 = dma.vmem_to_smem %s10_s14, 32, %s494_s16, [#allocation2] }
   0xc   :  { %472 = dma.done.wait [#allocation2], 32 }
   0xd   :  { %473 = vsyncadd [#allocation2], 4294967264 }
   0xe   :  { %14 = sfence }
   0xf   :  { %15 = vsyncpa [#allocation5], 0 }
  0x10   :  { %17 = vsyncpa [#allocation5 + $0x1], 0  ;;  %s520_s17 = smov 0   ;;  %s522_s18 = smov 0  }
  0x11   :  { %s524_s0 = smov 0   ;;  %s526_s19 = smov 0  }
  0x12 LB: > { %s541_s20 = sadd.s32 4294967295, %s492_s19   ;;  %s361_s21 = sadd.s32 4294967294, %s492_s19   ;;  %s492_s19 = sphi %s526_s19, %s672_s19   ;;  %s488_s0 = sphi %s524_s0, %s671_s0   ;;  %s484_s18 = sphi %s522_s18, %s670_s18   ;;  %s480_s17 = sphi %s520_s17, %s669_s17  }
  0x13   : > { %s545_s22 = sadd.s32 1, %s492_s19   ;;  %s82_s23 = sadd.s32 1, %s488_s0 }
  0x14   : > { %s79_s24 = ssub.s32 %s492_s19, %s545_s22  ;;  %p92_p5 = scmp.ne.s32.totalorder %s488_s0, %s484_s18 }
  0x15   : > { %p80_p6 = scmp.eq.s32.totalorder %s79_s24, 0  ;;  %p93_p7 = scmp.eq.s32.totalorder %s541_s20, 1 }
  0x16   : > { %p98_p8 = scmp.ne.s32.totalorder %s484_s18, %s480_s17  ;;  %p99_p9 = scmp.eq.s32.totalorder %s361_s21, 1 }
  0x17   : > { %s556_s25 = scalar_select %p80_p6, %s488_s0, %s82_s23  }
  0x18   : > { %p558_p10 = por %p93_p7, %p92_p5  ;;  %p562_p11 = por %p99_p9, %p98_p8 }
  0x19   : > { %665 = sst [smem:[#allocation8_spill]] %s556_s25  ;;  %p364_p12 = scmp.ge.s32.totalorder %s492_s19, 1 }
  0x1a   : > { %p124_p13 = scmp.lt.s32.totalorder %s492_s19, 3 }
  0x1c   : > { %p125_p0 = pnand %p364_p12, %p124_p13 }
  0x1d   : > { %p149_p1 = scmp.lt.s32.totalorder (!%p125_p0), %s541_s20, 1  ;;  %s570_s28 = sshll.u32 (!%p125_p0), %s541_s20, 7  ;;  %vm230_vm0 = vcmask (!%p125_p0), 57344   ;;  %v495_v38 = vmov (!%p125_p0), -1e-10  }
  0x1e   : > { %128 = sbr.rel (%p125_p0) target bundleno = 87 (0x57), region = 24  ;;  %s159_s29 = sadd.s32 (!%p125_p0), 9, %s570_s28 }
  0x1f   : > { %s160_s4 = sld [smem:[#allocation3 + %s159_s29]] (!%p125_p0)  ;;  %s163_s5 = sadd.s32 (!%p125_p0), 10, %s570_s28 }
  0x20   : > { %s164_s7 = sld [smem:[#allocation3 + %s163_s5]] (!%p125_p0)  ;;  %s167_s11 = sadd.s32 (!%p125_p0), 11, %s570_s28 }
  0x21   : > { %s168_s12 = sld [smem:[#allocation3 + %s167_s11]] (!%p125_p0)  ;;  %s174_s14 = sadd.s32 (!%p125_p0), 1, %s570_s28 }
  0x22   : > { %s171_s13 = sld [smem:[#allocation3 + %s570_s28]] (!%p125_p0)  ;;  %s182_s15 = sadd.s32 (!%p125_p0), 2, %s570_s28 }
  0x23   : > { %s175_s16 = sld [smem:[#allocation3 + %s174_s14]] (!%p125_p0)  ;;  %s210_s23 = sadd.s32 (!%p125_p0), 6, %s570_s28 }
  0x24   : > { %s183_s21 = sld [smem:[#allocation3 + %s182_s15]] (!%p125_p0)  ;;  %s214_s24 = sadd.s32 (!%p125_p0), 7, %s570_s28 }
  0x25   : > { %s574_s30 = scalar_select %p149_p1, %s541_s20, 1  ;;  %v161_v1 = vstv %s160_s4 }
  0x26   : > { %v165_v2 = vstv %s164_s7  ;;  %s211_s29 = sld [smem:[#allocation3 + %s210_s23]]  ;;  %s222_s25 = sadd.s32 8, %s570_s28 }
  0x27   : > { %s366_s6 = sshll.u32 %s574_s30, 2  ;;  %s215_s5 = sld [smem:[#allocation3 + %s214_s24]]  ;;  %v169_v3 = vstv %s168_s12 }
  0x28   : > { %s152_s10 = scalar_lea.vmem %s662_s1, %s366_s6  ;;  %v172_v4 = vstv %s171_s13  ;;  %s223_s8 = sld [smem:[#allocation3 + %s222_s25]] }
  0x29   : > { %v157_v0 = vld [vmem:[%s152_s10] sm:$0x7]  ;;  %s238_s9 = sadd.s32 14, %s570_s28  ;;  %v176_v8 = vstv %s175_s16  ;;  %s190_s4 = sadd.s32 3, %s570_s28 }
  0x2a   : > { %v162_v5 = vsub.f32 %v157_v0, %v161_v1  ;;  %v166_v6 = vsub.f32 %v157_v0, %v165_v2  ;;  %v170_v7 = vsub.f32 %v157_v0, %v169_v3  ;;  %v184_v9 = vstv %s183_s21  ;;  %s591_s11 = sld [smem:[#allocation3 + %s238_s9]]  ;;  %s194_s10 = sadd.s32 4, %s570_s28 }
  0x2b   : > { %s191_s7 = sld [smem:[#allocation3 + %s190_s4]]  ;;  %s202_s12 = sadd.s32 5, %s570_s28 }
  0x2c   : > { %v173_v10 = vmul.f32 %v172_v4, %v162_v5  ;;  %v177_v11 = vmul.f32 %v176_v8, %v166_v6  ;;  %v185_v12 = vmul.f32 %v184_v9, %v170_v7  ;;  %v212_v13 = vstv %s211_s29  ;;  %s195_s25 = sld [smem:[#allocation3 + %s194_s10]]  ;;  %s601_s16 = scalar_lea.vmem %s663_s2, %s366_s6 }
  0x2d   : > { %v216_v14 = vstv %s215_s5  ;;  %v213_v17 = vmul.f32 %v212_v13, %v162_v5  ;;  %s203_s13 = sld [smem:[#allocation3 + %s202_s12]]  ;;  %s234_s21 = sadd.s32 12, %s570_s28 }
  0x2e   : > { %v179_v15 = vrot.slane %v177_v11, 1  ;;  %v187_v16 = vrot.slane %v185_v12, 2  ;;  %v217_v18 = vmul.f32 %v216_v14, %v166_v6  ;;  %v224_v19 = vstv %s223_s8  ;;  %s236_s30 = sadd.s32 13, %s570_s28  ;;  %s235_s6 = sld [smem:[#allocation3 + %s234_s21]] }
  0x2f   : > { %v225_v22 = vmul.f32 %v224_v19, %v170_v7  ;;  %s237_s23 = sld [smem:[#allocation3 + %s236_s30]]  ;;  %s146_s24 = sand.u32 1, %s484_s18  }
  0x30   : > { %v181_v20 = vadd.f32 %v179_v15, %v173_v10  ;;  %v219_v21 = vrot.slane %v217_v18, 1  ;;  %v240_v26 = vstv %s591_s11  ;;  %s365_s28 = sshll.u32 %s146_s24, 1  ;;  %s370_s8 = sshll.u32 %s541_s20, 5 }
  0x31   : > { %v227_v25 = vrot.slane %v225_v22, 2  ;;  %v192_v27 = vstv %s191_s7  ;;  %s148_s29 = scalar_lea.vmem [#allocation4], %s365_s28  ;;  %s619_s4 = scalar_lea.hbm %s664_s3, %s370_s8 }
  0x32   : > { %v189_v23 = vadd.f32 %v187_v16, %v181_v20  ;;  %v221_v24 = vadd.f32 %v219_v21, %v213_v17  ;;  %v196_v29 = vstv %s195_s25  ;;  %v193_v30 = vmul.f32 %v192_v27, %v162_v5  ;;  %s278_s5 = sshll.u32 %s148_s29, 4  ;;  %s262_s7 = scalar_lea.sflag [#allocation5], %s146_s24  ;;  %s614_s5 = int_to_ptr.vmem [resolvable:$true] %s278_s5 }
  0x33   : > { %v197_v31 = vmul.f32 %v196_v29, %v166_v6  ;;  %v204_v32 = vstv %s203_s13  ;;  %s428_s10 = scalar_lea.vmem %s614_s5, 32  ;;  %s496_s20 = smov [#allocation4]  }
  0x34   : > { %v229_v28 = vadd.f32 %v227_v25, %v221_v24  ;;  %231 = vst.msk [vmem:[%s601_s16] sm:$0x1] %vm230_vm0, %v189_v23  ;;  %v205_v34 = vmul.f32 %v204_v32, %v170_v7  ;;  %v249_v43 = vstv %s235_s6  ;;  %p429_p2 = scmp.ne.s32.totalorder %s614_s5, %s428_s10  ;;  %s432_s25 = sshll.u32 %s496_s20, 4  ;;  %s433_s25 = int_to_ptr.vmem [resolvable:$false] %s432_s25 }
  0x35   : > { %v199_v35 = vrot.slane %v197_v31, 1  ;;  %v253_v44 = vstv %s237_s23  ;;  %v250_v45 = vmul.f32 %v249_v43, %v189_v23  ;;  %s434_s12 = scalar_lea.vmem %s433_s25, 64  ;;  %p435_p5 = scmp.lt.s32.totalorder %s614_s5, %s433_s25 }
  0x36   : > { %v241_v33 = vmul.f32 %v240_v26, %v229_v28  ;;  %233 = vst.msk [vmem:[%s601_s16 + $0x2] sm:$0x1] %vm230_vm0, %v229_v28  ;;  %v207_v37 = vrot.slane %v205_v34, 2  ;;  %p430_p3 = pnand %p429_p2, %p558_p10  ;;  %p436_p6 = scmp.lt.s32.totalorder %s434_s12, %s428_s10 }
  0x37   : > { %v201_v40 = vadd.f32 %v199_v35, %v193_v30 }
  0x38   : > { %v242_v36 = vand.u32 2147483647, %v241_v33  ;;  %vm244_vm1 = vcmp.ge.f32.partialorder %v241_v33, 0.0  ;;  %p431_p4 = pneg %p430_p3  ;;  %p437_p7 = por %p436_p6, %p435_p5 }
  0x39   : > { %v245_v39 = vsel %vm244_vm1, 1e-10, %v495_v38  ;;  %v209_v42 = vadd.f32 %v207_v37, %v201_v40 }
  0x3a   : > { %vm243_vm2 = vcmp.lt.f32.partialorder %v242_v36, 1e-10  ;;  %p438_p8 = pnand %p437_p7, %p431_p4 }
  0x3b   : > { %v246_v41 = vsel %vm243_vm2, %v245_v39, %v241_v33  ;;  %232 = vst.msk [vmem:[%s601_s16 + $0x1] sm:$0x1] %vm230_vm0, %v209_v42  ;;  %v254_v46 = vmul.f32 %v253_v44, %v209_v42 }
  0x3c   : > { %414 = vrcp.f32 %v246_v41 }
  0x46   : > { %v415_v47 = vpop.eup %414 }
  0x47   : > { %v251_v48 = vmul.f32 %v415_v47, %v250_v45  ;;  %v255_v49 = vmul.f32 %v415_v47, %v254_v46 }
  0x49   : > { %252 = vst.msk [vmem:[%s148_s29] sm:$0x1] %vm230_vm0, %v251_v48  ;;  %256 = vst.msk [vmem:[%s148_s29 + $0x1] sm:$0x1] %vm230_vm0, %v255_v49 }
  0x4a   : > { %441 = shalt.err (!%p438_p8)
}
  0x4b   : > { %s442_s13 = scalar_lea.hbm %s619_s4, 32  ;;  %s446_s16 = scalar_lea.hbm %s664_s3, 64 }
  0x4c   : > { %p443_p9 = scmp.ne.s32.totalorder %s619_s4, %s442_s13  ;;  %p447_p0 = scmp.lt.u32.totalorder %s619_s4, %s664_s3 }
  0x4d   : > { %p448_p1 = scmp.lt.u32.totalorder %s446_s16, %s442_s13  ;;  %p450_p3 = scmp.lt.u32.totalorder %s442_s13, %s619_s4 }
  0x4e   : > { %p444_p12 = pnand %p443_p9, %p558_p10 }
  0x4f   : > { %p449_p2 = por %p448_p1, %p447_p0 }
  0x50   : > { %p445_p13 = pneg %p444_p12 }
  0x51   : > { %p451_p4 = por %p450_p3, %p449_p2 }
  0x53   : > { %p452_p5 = pnand %p451_p4, %p445_p13 }
  0x55   : > { %455 = shalt.err (!%p452_p5)
}
  0x56   : > { %373 = dma.vmem_to_hbm [thread:$0]  (%p558_p10), %s614_s5, 32, %s619_s4, %s262_s7  }
  0x57 PF: > { %p379_p6 = scmp.ge.s32.totalorder %s492_s19, 2  ;;  %s297_s6 = sand.u32 1, %s480_s17  }
  0x58   : > { %s298_s23 = scalar_lea.sflag [#allocation5], %s297_s6 }
  0x59   : > { %p376_p7 = pnand %p379_p6, %p562_p11 }
  0x5b   : > { %475 = dma.done.wait (!%p376_p7), %s298_s23, 32  }
  0x5c   : > { %477 = vsyncadd (!%p376_p7), %s298_s23, 4294967264  ;;  %s668_s24 = sld [smem:[#allocation8_spill]]  ;;  %p20_p8 = scmp.ge.s32.totalorder %s545_s22, 4  }
  0x5d   : > { %s669_s17 = smov %s484_s18  ;;  %s670_s18 = smov %s488_s0 }
  0x5e   : > { %s672_s19 = smov %s545_s22  ;;  %22 = sbr.rel (!%p20_p8) target bundleno = 18 (0x12), region = 71 }
  0x62   : > { %s671_s0 = smov %s668_s24 }
  0x65   :  { %303 = vsyncpa [#allocation5], 1 }
  0x66   :  { %305 = vsyncpa [#allocation5 + $0x1], 1 }

</bundles_post_ra>
